<compile_context>
chip_gen: v7x
topology: tpu7x:2x2x1
jax: 0.10.0
libtpu: 0.0.40
codegen_flags: <defaults>
</compile_context>

<pallas_src>
import functools

import jax
import jax.numpy as jnp
from jax import lax
from jax.experimental import pallas as pl
from jax.experimental.pallas import tpu as pltpu


def _round_up(n, m):
    return ((n + m - 1) // m) * m


# lhs (O, K) . rhs (Bt, K) contracted over the shared minor dim K -> (O, Bt)
_TRANS_B = (((1,), (1,)), ((), ()))


def _pg_kernel(x_ref, w1_ref, b1_ref, w2_ref, b2_ref, w3_ref, b3_ref, o_ref):
    # x tile: (Bt, 4) f32, batch on sublanes. Contracting the minor dim of
    # both operands yields h1 feature-major / batch-on-lanes without any
    # wrapper-side transpose.
    xb = x_ref[...].astype(jnp.bfloat16)                               # (Bt, 4)

    # Layer 1: (24,4) . (Bt,4)^T -> (24, Bt); f32 accumulate, bias+relu in f32.
    h1 = lax.dot_general(w1_ref[...], xb, _TRANS_B,
                         preferred_element_type=jnp.float32)
    h1 = jnp.maximum(h1 + b1_ref[...], 0.0)                            # (24, Bt)

    # Layer 2: (36,24) @ (24,Bt)
    h2 = jnp.dot(w2_ref[...], h1.astype(jnp.bfloat16),
                 preferred_element_type=jnp.float32)
    h2 = jnp.maximum(h2 + b2_ref[...], 0.0)                            # (36, Bt)

    # Layer 3 + sigmoid; (1, Bt) lane-dense store.
    z = jnp.dot(w3_ref[...], h2.astype(jnp.bfloat16),
                preferred_element_type=jnp.float32) + b3_ref[...]
    # sigmoid(z) == 0.5 * tanh(0.5 * z) + 0.5  -> EUP tanh, no VALU divide.
    o_ref[...] = (0.5 * jnp.tanh(0.5 * z) + 0.5).astype(o_ref.dtype)


@functools.partial(jax.jit, static_argnames=("max_tile",))
def pg_forward(x, params, *, max_tile=16384):
    """x: (B, 4) float32. params: w{1,2,3} as (out,in) f32, b{1,2,3} as (out,1) f32.

    Returns (B, 1) float32 matching PyTorch PG.forward semantics
    (bf16 MXU inputs, f32 accumulation)."""
    B = x.shape[0]
    if B == 0:                                         # empty-batch guard
        return jnp.zeros((0, 1), jnp.float32)

    # Batch tile: multiple of 128 lanes; >= 2 grid steps whenever B > 128 so
    # both v7x TensorCores get work; capped so the per-step working set stays
    # comfortably inside VMEM on v5e / v6e / v7x.
    max_tile = max(128, _round_up(int(max_tile), 128))
    b128 = _round_up(B, 128)
    if b128 <= 128:
        n_steps, b_tile = 1, 128
    else:
        n_steps = max(2, pl.cdiv(b128, max_tile))
        b_tile = _round_up(pl.cdiv(b128, n_steps), 128)
    b_pad = n_steps * b_tile

    # Pad batch rows only when the tile does not divide B (16 bytes/row).
    x_p = x if b_pad == B else jnp.pad(x, ((0, b_pad - B), (0, 0)))

    # One-time bf16 cast of the (tiny) weights; biases stay f32.
    w1 = params["w1"].astype(jnp.bfloat16)
    w2 = params["w2"].astype(jnp.bfloat16)
    w3 = params["w3"].astype(jnp.bfloat16)

    const = lambda i: (0, 0)       # weights/biases: VMEM-resident across steps

    out = pl.pallas_call(
        _pg_kernel,
        out_shape=jax.ShapeDtypeStruct((1, b_pad), jnp.float32),
        grid_spec=pltpu.PrefetchScalarGridSpec(
            num_scalar_prefetch=0,
            grid=(n_steps,),
            in_specs=[
                pl.BlockSpec((b_tile, 4), lambda i: (i, 0)),      # x tile
                pl.BlockSpec((24, 4), const),                     # w1 (bf16)
                pl.BlockSpec((24, 1), const),                     # b1
                pl.BlockSpec((36, 24), const),                    # w2 (bf16)
                pl.BlockSpec((36, 1), const),                     # b2
                pl.BlockSpec((1, 36), const),                     # w3 (bf16)
                pl.BlockSpec((1, 1), const),                      # b3
            ],
            out_specs=pl.BlockSpec((1, b_tile), lambda i: (0, i)),  # lane-dense
        ),
        compiler_params=pltpu.CompilerParams(
            dimension_semantics=("parallel",),        # v7x: 2 TCs split the grid
            vmem_limit_bytes=40 * 1024 * 1024,        # covers the x double-buffer
        ),
    )(x_p, w1, params["b1"], w2, params["b2"], w3, params["b3"])

    return out[:, :B].T                                                # (B, 1)


def init_params(key):
    """PyTorch-style init: U(-1/sqrt(fan_in), 1/sqrt(fan_in)).

    Weights stored as (out_features, in_features); biases as (out_features, 1)."""
    dims = [(4, 24), (24, 36), (36, 1)]
    params = {}
    for i, (fan_in, fan_out) in enumerate(dims, start=1):
        key, kw, kb = jax.random.split(key, 3)
        bound = 1.0 / (fan_in ** 0.5)
        params[f"w{i}"] = jax.random.uniform(
            kw, (fan_out, fan_in), jnp.float32, -bound, bound)
        params[f"b{i}"] = jax.random.uniform(
            kb, (fan_out, 1), jnp.float32, -bound, bound)
    return params


def pg_reference(x, params, compute_dtype=jnp.float32):
    """Plain-JAX reference. compute_dtype=bfloat16 mirrors the kernel's
    bf16-operand / f32-accumulate matmuls; float32 gives the exact PyTorch math."""
    def dense(h, w, b):
        return jnp.dot(h.astype(compute_dtype), w.T.astype(compute_dtype),
                       preferred_element_type=jnp.float32) + b.T
    h = jnp.maximum(dense(x, params["w1"], params["b1"]), 0.0)
    h = jnp.maximum(dense(h, params["w2"], params["b2"]), 0.0)
    return jax.nn.sigmoid(dense(h, params["w3"], params["b3"]))


if __name__ == "__main__":
    key = jax.random.PRNGKey(0)
    key, kx = jax.random.split(key)
    params = init_params(key)

    # Small batch of 4-dim CartPole-style states -> single 128-lane tile.
    B = 8
    x = jax.random.normal(kx, (B, 4), jnp.float32)
    out = jax.block_until_ready(pg_forward(x, params))
    assert out.shape == (B, 1) and out.dtype == jnp.float32
    assert jnp.allclose(out, pg_reference(x, params, jnp.bfloat16),
                        atol=3e-3, rtol=3e-3), "mismatch vs bf16 reference"
    assert jnp.allclose(out, pg_reference(x, params),
                        atol=2e-2, rtol=2e-2), "mismatch vs f32 reference"

    # Multi-step grid + batch-padding paths:
    #   default tile -> 2 steps of 256; max_tile=128 -> 3 steps of 128.
    B2 = 300
    x2 = jax.random.normal(jax.random.PRNGKey(1), (B2, 4), jnp.float32)
    for mt in (16384, 128):
        out2 = jax.block_until_ready(pg_forward(x2, params, max_tile=mt))
        assert out2.shape == (B2, 1)
        assert jnp.allclose(out2, pg_reference(x2, params, jnp.bfloat16),
                            atol=3e-3, rtol=3e-3), f"mismatch (tiled, mt={mt})"
        assert jnp.allclose(out2, pg_reference(x2, params),
                            atol=2e-2, rtol=2e-2), f"mismatch vs f32 (mt={mt})"

    print("KERNEL_OK")
</pallas_src>

<mosaic_0001>
module attributes {stable_mosaic.version = 11 : i64} {
  func.func @_pg_kernel(%arg0: i32, %arg1: memref<128x4xf32, #tpu.memory_space<vmem>>, %arg2: memref<24x4xbf16, #tpu.memory_space<vmem>>, %arg3: memref<24x1xf32, #tpu.memory_space<vmem>>, %arg4: memref<36x24xbf16, #tpu.memory_space<vmem>>, %arg5: memref<36x1xf32, #tpu.memory_space<vmem>>, %arg6: memref<1x36xbf16, #tpu.memory_space<vmem>>, %arg7: memref<1x1xf32, #tpu.memory_space<vmem>>, %arg8: memref<1x128xf32, #tpu.memory_space<vmem>>) attributes {dimension_semantics = [#tpu.dimension_semantics<parallel>], iteration_bounds = array<i64: 1>, scalar_prefetch = 0 : i64, scratch_operands = 0 : i64, tpu.core_type = #tpu.core_type<tc>, window_params = [{transform_indices = @transform_0, window_bounds = array<i64: 128, 4>}, {pipeline_mode = #tpu.pipeline_mode<synchronous>, transform_indices = @transform_1, window_bounds = array<i64: 24, 4>}, {pipeline_mode = #tpu.pipeline_mode<synchronous>, transform_indices = @transform_2, window_bounds = array<i64: 24, 1>}, {pipeline_mode = #tpu.pipeline_mode<synchronous>, transform_indices = @transform_3, window_bounds = array<i64: 36, 24>}, {pipeline_mode = #tpu.pipeline_mode<synchronous>, transform_indices = @transform_4, window_bounds = array<i64: 36, 1>}, {pipeline_mode = #tpu.pipeline_mode<synchronous>, transform_indices = @transform_5, window_bounds = array<i64: 1, 36>}, {pipeline_mode = #tpu.pipeline_mode<synchronous>, transform_indices = @transform_6, window_bounds = array<i64: 1, 1>}, {transform_indices = @transform_7, window_bounds = array<i64: 1, 128>}]} {
    %c0 = arith.constant 0 : index
    %c0_0 = arith.constant 0 : index
    %0 = vector.load %arg1[%c0, %c0_0] : memref<128x4xf32, #tpu.memory_space<vmem>>, vector<128x4xf32>
    %1 = arith.truncf %0 : vector<128x4xf32> to vector<128x4xbf16>
    %c0_1 = arith.constant 0 : index
    %c0_2 = arith.constant 0 : index
    %2 = vector.load %arg2[%c0_1, %c0_2] : memref<24x4xbf16, #tpu.memory_space<vmem>>, vector<24x4xbf16>
    %cst = arith.constant dense<0.000000e+00> : vector<24x128xf32>
    %3 = tpu.matmul %2, %1, %cst {dimension_numbers = #tpu.dot_dimension_numbers<[1], [1], [0], [0], [0, 0, 1, 0], [], []>} : vector<24x4xbf16>, vector<128x4xbf16>, vector<24x128xf32> -> vector<24x128xf32>
    %c0_3 = arith.constant 0 : index
    %c0_4 = arith.constant 0 : index
    %4 = vector.load %arg3[%c0_3, %c0_4] : memref<24x1xf32, #tpu.memory_space<vmem>>, vector<24x1xf32>
    %5 = vector.broadcast %4 : vector<24x1xf32> to vector<24x128xf32>
    %6 = arith.addf %3, %5 : vector<24x128xf32>
    %cst_5 = arith.constant 0.000000e+00 : f32
    %7 = vector.broadcast %cst_5 : f32 to vector<24x128xf32>
    %8 = arith.maximumf %6, %7 : vector<24x128xf32>
    %c0_6 = arith.constant 0 : index
    %c0_7 = arith.constant 0 : index
    %9 = vector.load %arg4[%c0_6, %c0_7] : memref<36x24xbf16, #tpu.memory_space<vmem>>, vector<36x24xbf16>
    %10 = arith.truncf %8 : vector<24x128xf32> to vector<24x128xbf16>
    %cst_8 = arith.constant dense<0.000000e+00> : vector<36x128xf32>
    %11 = tpu.matmul %9, %10, %cst_8 {dimension_numbers = #tpu.dot_dimension_numbers<[1], [0], [0], [1], [0, 0, 1, 1], [], []>} : vector<36x24xbf16>, vector<24x128xbf16>, vector<36x128xf32> -> vector<36x128xf32>
    %c0_9 = arith.constant 0 : index
    %c0_10 = arith.constant 0 : index
    %12 = vector.load %arg5[%c0_9, %c0_10] : memref<36x1xf32, #tpu.memory_space<vmem>>, vector<36x1xf32>
    %13 = vector.broadcast %12 : vector<36x1xf32> to vector<36x128xf32>
    %14 = arith.addf %11, %13 : vector<36x128xf32>
    %cst_11 = arith.constant 0.000000e+00 : f32
    %15 = vector.broadcast %cst_11 : f32 to vector<36x128xf32>
    %16 = arith.maximumf %14, %15 : vector<36x128xf32>
    %c0_12 = arith.constant 0 : index
    %c0_13 = arith.constant 0 : index
    %17 = vector.load %arg6[%c0_12, %c0_13] : memref<1x36xbf16, #tpu.memory_space<vmem>>, vector<1x36xbf16>
    %18 = arith.truncf %16 : vector<36x128xf32> to vector<36x128xbf16>
    %cst_14 = arith.constant dense<0.000000e+00> : vector<1x128xf32>
    %19 = tpu.matmul %17, %18, %cst_14 {dimension_numbers = #tpu.dot_dimension_numbers<[1], [0], [0], [1], [0, 0, 1, 1], [], []>} : vector<1x36xbf16>, vector<36x128xbf16>, vector<1x128xf32> -> vector<1x128xf32>
    %c0_15 = arith.constant 0 : index
    %c0_16 = arith.constant 0 : index
    %20 = vector.load %arg7[%c0_15, %c0_16] : memref<1x1xf32, #tpu.memory_space<vmem>>, vector<1x1xf32>
    %21 = vector.broadcast %20 : vector<1x1xf32> to vector<1x128xf32>
    %22 = arith.addf %19, %21 : vector<1x128xf32>
    %cst_17 = arith.constant 5.000000e-01 : f32
    %23 = vector.broadcast %cst_17 : f32 to vector<1x128xf32>
    %24 = arith.mulf %23, %22 : vector<1x128xf32>
    %25 = math.tanh %24 : vector<1x128xf32>
    %cst_18 = arith.constant 5.000000e-01 : f32
    %26 = vector.broadcast %cst_18 : f32 to vector<1x128xf32>
    %27 = arith.mulf %26, %25 : vector<1x128xf32>
    %cst_19 = arith.constant 5.000000e-01 : f32
    %28 = vector.broadcast %cst_19 : f32 to vector<1x128xf32>
    %29 = arith.addf %27, %28 : vector<1x128xf32>
    %c0_20 = arith.constant 0 : index
    %c0_21 = arith.constant 0 : index
    %30 = vector.load %arg8[%c0_20, %c0_21] : memref<1x128xf32, #tpu.memory_space<vmem>>, vector<1x128xf32>
    tpu.vector_store %arg8[%c0_20, %c0_21], %29 {strides = array<i32>} : memref<1x128xf32, #tpu.memory_space<vmem>>, vector<1x128xf32>,
    return
  }
  func.func @transform_0(%arg0: i32) -> (i32, i32) {
    %c0_i32 = arith.constant 0 : i32
    %c0_i32_0 = arith.constant 0 : i32
    return %arg0, %c0_i32 : i32, i32
  }
  func.func @transform_1(%arg0: i32) -> (i32, i32) {
    %c0_i32 = arith.constant 0 : i32
    %c0_i32_0 = arith.constant 0 : i32
    %c0_i32_1 = arith.constant 0 : i32
    return %c0_i32, %c0_i32_0 : i32, i32
  }
  func.func @transform_2(%arg0: i32) -> (i32, i32) {
    %c0_i32 = arith.constant 0 : i32
    %c0_i32_0 = arith.constant 0 : i32
    %c0_i32_1 = arith.constant 0 : i32
    return %c0_i32, %c0_i32_0 : i32, i32
  }
  func.func @transform_3(%arg0: i32) -> (i32, i32) {
    %c0_i32 = arith.constant 0 : i32
    %c0_i32_0 = arith.constant 0 : i32
    %c0_i32_1 = arith.constant 0 : i32
    return %c0_i32, %c0_i32_0 : i32, i32
  }
  func.func @transform_4(%arg0: i32) -> (i32, i32) {
    %c0_i32 = arith.constant 0 : i32
    %c0_i32_0 = arith.constant 0 : i32
    %c0_i32_1 = arith.constant 0 : i32
    return %c0_i32, %c0_i32_0 : i32, i32
  }
  func.func @transform_5(%arg0: i32) -> (i32, i32) {
    %c0_i32 = arith.constant 0 : i32
    %c0_i32_0 = arith.constant 0 : i32
    %c0_i32_1 = arith.constant 0 : i32
    return %c0_i32, %c0_i32_0 : i32, i32
  }
  func.func @transform_6(%arg0: i32) -> (i32, i32) {
    %c0_i32 = arith.constant 0 : i32
    %c0_i32_0 = arith.constant 0 : i32
    %c0_i32_1 = arith.constant 0 : i32
    return %c0_i32, %c0_i32_0 : i32, i32
  }
  func.func @transform_7(%arg0: i32) -> (i32, i32) {
    %c0_i32 = arith.constant 0 : i32
    %c0_i32_0 = arith.constant 0 : i32
    return %c0_i32, %arg0 : i32, i32
  }
}

</mosaic_0001>

<bundles_post_ra>
// kernel: pg_forward.1
= control target key start
LH: loop header
LB: loop body
LE: loop exit
PB: predicated region body
PF: predicated region fallthrough
CT: control target
= control target key end

     0   :  { %vm82_vm0 = vcmask 31744   ;;  %v456_v3 = vmov 0   ;;  %v457_v45 = vmov 0.0   ;;  %vm458_vm1 = vmmov 0   ;;  %s626_s0 = inlined_call_operand.vmem [shape: f32[128,4], index: 0, kind: input, shape index: {}]   ;;  %s627_s6 = inlined_call_operand.<no memory space> [shape: f32[1,1], index: 6, kind: input, shape index: {}]   ;;  %s628_s1 = inlined_call_operand.vmem [shape: bf16[24,4], index: 1, kind: input, shape index: {}]   ;;  %s629_s2 = inlined_call_operand.vmem [shape: f32[24,1], index: 2, kind: input, shape index: {}]   ;;  %s630_s4 = inlined_call_operand.vmem [shape: f32[36,1], index: 4, kind: input, shape index: {}]   ;;  %s631_s3 = inlined_call_operand.vmem [shape: bf16[36,24], index: 3, kind: input, shape index: {}]   ;;  %s632_s5 = inlined_call_operand.vmem [shape: bf16[1,36], index: 5, kind: input, shape index: {}]   ;;  %s633_s7 = inlined_call_operand.vmem [shape: f32[1,128], index: 7, kind: output, shape index: {}]  }
   0x1   :  { %v29_v0 = vld [vmem:[%s626_s0] sm:$0xff]  ;;  %v30_v1 = vld [vmem:[%s626_s0 + $0x8] sm:$0xff]  ;;  %v31_v2 = vld [vmem:[%s626_s0 + $0x10] sm:$0xff]  ;;  %447 = vset.pattern.permute.xlu0 %v456_v3  ;;  %448 = vset.pattern.permute.xlu1 %v456_v3  ;;  %v12_v4 = vstv %s627_s6  ;;  %vm224_vm2 = vcmask 1043456   ;;  %vm214_vm3 = vcmask 195584   ;;  %vm307_vm4 = vcmask 1041408  }
   0x2   :  { %v45_v5 = vpack.c.bf16 %v30_v1, %v29_v0  ;;  %v32_v6 = vld [vmem:[%s626_s0 + $0x18] sm:$0xff]  ;;  %13 = vst [vmem:[#allocation2] sm:$0x1] %v12_v4  ;;  %v33_v9 = vld [vmem:[%s626_s0 + $0x20] sm:$0xff]  ;;  %v34_v10 = vld [vmem:[%s626_s0 + $0x28] sm:$0xff]  ;;  %410 = vmatprep.subr.bf16.mxu1 %v457_v45  ;;  %414 = vmatprep.mubr.msk.bf16.mxu1 %vm458_vm1, %v457_v45  ;;  %vm303_vm5 = vcmask 293888  }
   0x3   :  { %v46_v7 = vpack.c.bf16 %v32_v6, %v31_v2  ;;  %v449_v11 = vld [vmem:[%s628_s1] sm:$0xff]   ;;  %v57_v13 = vld [vmem:[%s629_s2 + $0x8] sm:$0xff]  ;;  %v58_v14 = vld [vmem:[%s629_s2 + $0x10] sm:$0xff]  ;;  %v47_v16 = vpack.c.bf16 %v34_v10, %v33_v9 }
   0x4   :  { %436 = vmatprep.subr.msk.bf16.mxu0 %vm82_vm0, %v45_v5  ;;  %v90_v8 = vsel %vm82_vm0, %v45_v5, 0  ;;  %v56_v12 = vld [vmem:[%s629_s2] sm:$0xff]  ;;  %406 = vmatprep.mubr.msk.bf16.mxu0 %vm82_vm0, %v449_v11  ;;  %v172_v18 = vld [vmem:[%s630_s4 + $0x8] sm:$0xff]  ;;  %v35_v19 = vld [vmem:[%s626_s0 + $0x30] sm:$0xff] }
   0x5   :  { %391 = vmatpush3.bf16.xpose.msra.mxu0 %v90_v8  ;;  %61 = vperm.xlu0 %447, %v56_v12   ;;  %v93_v15 = vsel %vm82_vm0, %v46_v7, 0  ;;  %v171_v17 = vld [vmem:[%s630_s4] sm:$0xff]  ;;  %v36_v20 = vld [vmem:[%s626_s0 + $0x38] sm:$0xff]  ;;  %v173_v21 = vld [vmem:[%s630_s4 + $0x10] sm:$0xff]  ;;  %v96_v23 = vsel %vm82_vm0, %v47_v16, 0 }
   0x6   :  { %437 = vmatprep.subr.msk.bf16.mxu0 %vm82_vm0, %v46_v7  ;;  %71 = vperm.xlu1 %448, %v58_v14   ;;  %v174_v22 = vld [vmem:[%s630_s4 + $0x18] sm:$0xff]  ;;  %v48_v24 = vpack.c.bf16 %v36_v20, %v35_v19  ;;  %v175_v25 = vld [vmem:[%s630_s4 + $0x20] sm:$0xf]  ;;  %v38_v28 = vld [vmem:[%s626_s0 + $0x48] sm:$0xff] }
   0x7   :  { %v37_v27 = vld [vmem:[%s626_s0 + $0x40] sm:$0xff]  ;;  %v39_v31 = vld [vmem:[%s626_s0 + $0x50] sm:$0xff]  ;;  %v40_v32 = vld [vmem:[%s626_s0 + $0x58] sm:$0xff] }
   0x8   :  { %v99_v29 = vsel %vm82_vm0, %v48_v24, 0  ;;  %v49_v30 = vpack.c.bf16 %v38_v28, %v37_v27  ;;  %v50_v34 = vpack.c.bf16 %v40_v32, %v39_v31  ;;  %v41_v35 = vld [vmem:[%s626_s0 + $0x60] sm:$0xff]  ;;  %v42_v36 = vld [vmem:[%s626_s0 + $0x68] sm:$0xff]  ;;  %v43_v39 = vld [vmem:[%s626_s0 + $0x70] sm:$0xff] }
   0x9   :  { %66 = vperm.xlu0 %447, %v57_v13   ;;  %v293_v26 = vld [vmem:[#allocation2] sm:$0x1]  ;;  %v51_v38 = vpack.c.bf16 %v42_v36, %v41_v35  ;;  %v44_v40 = vld [vmem:[%s626_s0 + $0x78] sm:$0xff]  ;;  %v450_v44 = vld [vmem:[%s628_s1 + $0x8] ss:$0 sps:$4 sm:$0xff]  }
   0xa   :  { %178 = vperm.xlu1 %448, %v171_v17   ;;  %v102_v33 = vsel %vm82_vm0, %v49_v30, 0  ;;  %v105_v37 = vsel %vm82_vm0, %v50_v34, 0  ;;  %v52_v42 = vpack.c.bf16 %v44_v40, %v43_v39  ;;  %v451_v62 = vld [vmem:[%s631_s3] sm:$0xff]   ;;  %v452_v63 = vld [vmem:[%s631_s3 + $0x8] sm:$0xff]  }
   0xb   :  { %v108_v41 = vsel %vm82_vm0, %v51_v38, 0  ;;  %v453_v0 = vld [vmem:[%s631_s3 + $0x10] ss:$0 sps:$4 sm:$0x33]   ;;  %v289_v32 = vld [vmem:[%s632_s5] sm:$0x1] }
   0xc   :  { %v111_v43 = vsel %vm82_vm0, %v52_v42, 0 }
   0xd   :  { %393 = vmatpush3.bf16.xpose.msra.mxu0 %v93_v15  ;;  %183 = vperm.xlu0 %447, %v172_v18  }
   0xe   :  { %438 = vmatprep.subr.msk.bf16.mxu0 %vm82_vm0, %v47_v16  ;;  %188 = vperm.xlu1 %448, %v173_v21  }
  0x11   :  { %193 = vperm.xlu0 %447, %v174_v22  }
  0x12   :  { %198 = vperm.xlu1 %448, %v175_v25  }
  0x15   :  { %395 = vmatpush3.bf16.xpose.msra.mxu0 %v96_v23  ;;  %296 = vperm.xlu0 %447, %v293_v26  }
  0x16   :  { %439 = vmatprep.subr.msk.bf16.mxu0 %vm82_vm0, %v48_v24 }
  0x1d   :  { %397 = vmatpush3.bf16.xpose.msra.mxu0 %v99_v29 }
  0x1e   :  { %440 = vmatprep.subr.msk.bf16.mxu0 %vm82_vm0, %v49_v30 }
  0x25   :  { %399 = vmatpush3.bf16.xpose.msra.mxu0 %v102_v33  ;;  %v299_v33 = vlaneseq }
  0x26   :  { %441 = vmatprep.subr.msk.bf16.mxu0 %vm82_vm0, %v50_v34 }
  0x27   :  { %v300_v34 = vshrl.u32 %v299_v33, 7 }
  0x29   :  { %v301_v35 = vsub.s32 0, %v300_v34 }
  0x2d   :  { %401 = vmatpush3.bf16.xpose.msra.mxu0 %v105_v37 }
  0x2e   :  { %442 = vmatprep.subr.msk.bf16.mxu0 %vm82_vm0, %v51_v38 }
  0x35   :  { %403 = vmatpush3.bf16.xpose.msra.mxu0 %v108_v41 }
  0x36   :  { %443 = vmatprep.subr.msk.bf16.mxu0 %vm82_vm0, %v52_v42 }
  0x3d   :  { %405 = vmatpush3.bf16.xpose.msra.mxu0 %v111_v43 }
  0x44   :  { %407 = vmatmul.mubr.msk.bf16.vlgmr.msra.gmra.mrb[0].mxu0 %vm82_vm0, %v450_v44 }
  0x84   :  { %v62_v46 = vpop.permute.xlu0 %61 }
  0x85   :  { %v72_v47 = vpop.permute.xlu1 %71 }
  0x88   :  { %v67_v53 = vpop.permute.xlu0 %66 }
  0x89   :  { %v179_v1 = vpop.permute.xlu1 %178 }
  0x8c   :  { %v184_v5 = vpop.permute.xlu0 %183 }
  0x8d   :  { %v189_v12 = vpop.permute.xlu1 %188 }
  0x90   :  { %v194_v16 = vpop.permute.xlu0 %193 }
  0x91   :  { %v199_v23 = vpop.permute.xlu1 %198 }
  0x94   :  { %v297_v36 = vpop.permute.xlu0 %296 }
  0x95   :  { %v302_v37 = vrot.slane %v297_v36, %v301_v35 }
 0x117   :  { %v408_v48 = vpop.f32.mrb[0].mxu0 }
 0x118   :  { %v156_v49 = vadd.f32 %v408_v48, %v72_v47  ;;  %v147_v50 = vpop.f32.mrb[1].mxu0 }
 0x119   :  { %v148_v51 = vadd.f32 %v147_v50, %v62_v46  ;;  %v409_v52 = vpop.f32.mrb[2].mxu0 }
 0x11a   :  { %v150_v54 = vpop.f32.mrb[3].mxu0  ;;  %v163_v56 = vmax.f32 %v156_v49, 0.0 }
 0x11b   :  { %v151_v55 = vadd.f32 %v150_v54, %v67_v53  ;;  %v161_v57 = vmax.f32 %v148_v51, 0.0 }
 0x11c   :  { %v170_v60 = vpack.c.bf16 %v163_v56, %v163_v56 }
 0x11d   :  { %v162_v58 = vmax.f32 %v151_v55, 0.0 }
 0x11e   :  { %v226_v61 = vsel %vm224_vm2, %v170_v60, 0 }
 0x11f   :  { %v169_v59 = vpack.c.bf16 %v162_v58, %v161_v57 }
 0x121   :  { %411 = vmatpush3.bf16.msra.mxu1 %v169_v59 }
 0x122   :  { %412 = vmatprep.subr.bf16.mxu1 %v457_v45 }
 0x125   :  { %413 = vmatpush3.bf16.msra.mxu1 %v226_v61 }
 0x126   :  { %426 = vmatprep.subr.bf16.mxu1 %v457_v45 }
 0x128   :  { %415 = vmatmul.mubr.msk.bf16.vlgmr.msra.gmra.mrb[0].mxu1 %vm214_vm3, %v451_v62 }
 0x129   :  { %418 = vmatprep.mubr.msk.bf16.mxu1 %vm458_vm1, %v457_v45 }
 0x130   :  { %419 = vmatmul.mubr.msk.bf16.gmra.mrb[4].mxu1 %vm214_vm3, %v452_v63 }
 0x131   :  { %422 = vmatprep.mubr.msk.bf16.mxu1 %vm458_vm1, %v457_v45 }
 0x138   :  { %423 = vmatmul.mubr.msk.bf16.gmra.mrb[8].mxu1 %vm214_vm3, %v453_v0 }
 0x139   :  { %432 = vmatprep.mubr.msk.bf16.mxu1 %vm458_vm1, %v457_v45 }
 0x1fb   :  { %v262_v2 = vpop.f32.mrb[0].mxu1 }
 0x1fc   :  { %v263_v3 = vadd.f32 %v262_v2, %v179_v1  ;;  %v416_v4 = vpop.f32.mrb[1].mxu1 }
 0x1fd   :  { %v265_v6 = vpop.f32.mrb[2].mxu1 }
 0x1fe   :  { %v266_v7 = vadd.f32 %v265_v6, %v184_v5  ;;  %v417_v8 = vpop.f32.mrb[3].mxu1  ;;  %v284_v9 = vmax.f32 %v263_v3, 0.0 }
 0x200   :  { %v285_v10 = vmax.f32 %v266_v7, 0.0 }
 0x202   :  { %v290_v11 = vpack.c.bf16 %v285_v10, %v284_v9 }
 0x203   :  { %v270_v13 = vpop.f32.mrb[4].mxu1 }
 0x204   :  { %v271_v14 = vadd.f32 %v270_v13, %v189_v12  ;;  %v420_v15 = vpop.f32.mrb[5].mxu1  ;;  %427 = vmatpush3.bf16.msra.mxu1 %v290_v11 }
 0x205   :  { %v273_v17 = vpop.f32.mrb[6].mxu1  ;;  %428 = vmatprep.subr.bf16.mxu1 %v457_v45 }
 0x206   :  { %v274_v18 = vadd.f32 %v273_v17, %v194_v16  ;;  %v421_v19 = vpop.f32.mrb[7].mxu1  ;;  %v286_v20 = vmax.f32 %v271_v14, 0.0 }
 0x208   :  { %v287_v21 = vmax.f32 %v274_v18, 0.0 }
 0x20a   :  { %v291_v22 = vpack.c.bf16 %v287_v21, %v286_v20 }
 0x20b   :  { %v278_v24 = vpop.f32.mrb[8].mxu1 }
 0x20c   :  { %v279_v25 = vadd.f32 %v278_v24, %v199_v23  ;;  %v424_v26 = vpop.f32.mrb[9].mxu1  ;;  %429 = vmatpush3.bf16.msra.mxu1 %v291_v22 }
 0x20d   :  { %v281_v27 = vpop.f32.mrb[10].mxu1  ;;  %430 = vmatprep.subr.bf16.mxu1 %v457_v45 }
 0x20e   :  { %v288_v28 = vmax.f32 %v279_v25, 0.0  ;;  %v425_v29 = vpop.f32.mrb[11].mxu1 }
 0x210   :  { %v292_v30 = vpack.c.bf16 %v288_v28, %v288_v28 }
 0x212   :  { %v309_v31 = vsel %vm307_vm4, %v292_v30, 0 }
 0x213   :  { %431 = vmatpush3.bf16.msra.mxu1 %v309_v31 }
 0x216   :  { %433 = vmatmul.mubr.msk.bf16.vlgmr.msra.gmra.mrb[12].mxu1 %vm303_vm5, %v289_v32 }
 0x2e9   :  { %v345_v38 = vpop.f32.mrb[12].mxu1 }
 0x2ea   :  { %v346_v39 = vadd.f32 %v345_v38, %v302_v37  ;;  %v434_v40 = vpop.f32.mrb[13].mxu1 }
 0x2eb   :  { %v348_v41 = vpop.f32.mrb[14].mxu1 }
 0x2ec   :  { %v351_v42 = vmul.f32 0.5, %v346_v39  ;;  %v435_v43 = vpop.f32.mrb[15].mxu1 }
 0x2ee   :  { %454 = vtanh.f32 %v351_v42 }
 0x2f8   :  { %v455_v44 = vpop.eup %454 }
 0x2f9   :  { %v353_v45 = vmul.f32 0.5, %v455_v44 }
 0x2fb   :  { %v354_v46 = vadd.f32 0.5, %v353_v45 }
 0x2fd   :  { %355 = vst [vmem:[%s633_s7] sm:$0x1] %v354_v46 }

</bundles_post_ra>
